<compile_context>
chip_gen: v6e
topology: v6e:2x2x1
jax: 0.10.0
libtpu: 0.0.40
codegen_flags: <defaults>
</compile_context>

<pallas_src>
import functools

import jax
import jax.numpy as jnp
from jax.experimental import pallas as pl
from jax.experimental.pallas import tpu as pltpu

FEAT_DIM = 32        # cfg.model.encoder_args.width (synthetic)
MLP_DIM_CRITIC = 64  # mlp_dim_critic


def _critic_kernel(in_ref, wenc_ref, w1p_ref, head_ref, out_ref):
    """One TM-wide slab of points (channels on sublanes, points on lanes)."""
    # TODO(synk): the real PointNeXt backbone (config-built set-abstraction /
    # grouping stages) has no clean single-kernel Pallas equivalent; it is
    # stood in for by a deterministic point-wise Linear(3->F) + ReLU.
    x8 = in_ref[...]                                     # (8, TM) f32: [x y z dx dy dz 1 0]
    x8b = x8.astype(wenc_ref.dtype)                      # bf16 — MXU operand only

    # Encoder stub Linear(3->F) + bias on the MXU (bias folded via the ones
    # row; dir / zero rows hit zero weight columns).  ReLU on the VPU.
    feat = jnp.maximum(
        jnp.dot(wenc_ref[...], x8b, preferred_element_type=jnp.float32), 0.0)  # (F, TM)

    # critic_layer[0]: Linear(F+6 -> H) with columns F..F+2 zeroed, plus b1,
    # as ONE MXU matmul over the packed RHS [feat | x y z | dx dy dz | 1 | 0].
    # Concat in f32 (sublane offsets are 8-aligned), single cast to bf16.
    rhs = jnp.concatenate([feat, x8], axis=0).astype(w1p_ref.dtype)            # (F+8, TM)
    h = jnp.maximum(
        jnp.dot(w1p_ref[...], rhs, preferred_element_type=jnp.float32), 0.0)   # (H, TM)

    # critic_layer[2..3]: Linear(H -> 1) + Sigmoid.  N=1 matmul as an
    # elementwise multiply + sublane (XLU) reduce; sigmoid on the EUP.
    o = jnp.sum(h * head_ref[:, 0:1], axis=0, keepdims=True)                   # (1, TM)
    o = o + head_ref[0:1, 1:2]                                                 # + b2
    out_ref[...] = jax.nn.sigmoid(o)                                           # lane-dense store


def _round_up(x: int, m: int) -> int:
    return ((x + m - 1) // m) * m


def make_params(key, feat_dim=FEAT_DIM, hidden=MLP_DIM_CRITIC):
    """Deterministic synthetic parameters (PyTorch-like uniform fan-in init)."""
    ks = jax.random.split(key, 6)

    def uni(k, shape, fan_in):
        bound = 1.0 / jnp.sqrt(jnp.float32(fan_in))
        return jax.random.uniform(k, shape, jnp.float32, -bound, bound)

    d_in = feat_dim + 6
    return {
        # stub encoder (stands in for PointNeXt)
        "wf": uni(ks[0], (3, feat_dim), 3),
        "bf": uni(ks[1], (1, feat_dim), 3),
        # critic_layer Linear(feat_dim + 6, hidden)
        "w1": uni(ks[2], (d_in, hidden), d_in),
        "b1": uni(ks[3], (1, hidden), d_in),
        # critic_layer Linear(hidden, 1)
        "w2": uni(ks[4], (hidden, 1), hidden),
        "b2": uni(ks[5], (1, 1), hidden),
    }


def _pack_params(params, mxu_dtype):
    """Collapse the 7 weight tensors into 3 resident kernel operands."""
    feat_dim = params["wf"].shape[1]
    hidden = params["w1"].shape[1]
    f32 = jnp.float32

    # Encoder weight (F, 8), matched to the in8 row layout [x y z dx dy dz 1 0].
    wenc = jnp.concatenate(
        [params["wf"].T,                          # acts on x, y, z
         jnp.zeros((feat_dim, 3), f32),           # ignore dx, dy, dz
         params["bf"].T,                          # bias via the ones row
         jnp.zeros((feat_dim, 1), f32)],          # zeros row
        axis=1).astype(mxu_dtype)                 # (F, 8)

    w1 = params["w1"]                             # (F+6, H)
    # Packed critic weight (H, F+8) for rhs = [feat | x y z | dx dy dz | 1 | 0].
    # Rows F..F+2 of W1 multiply the zeroed whole_queries columns -> dropped exactly.
    w1p = jnp.concatenate(
        [w1[:feat_dim, :].T,                      # (H, F)  feature half
         jnp.zeros((hidden, 3), f32),             # x, y, z (zeroed columns)
         w1[feat_dim + 3:, :].T,                  # (H, 3)  direction half
         params["b1"].T,                          # (H, 1)  b1 via the ones row
         jnp.zeros((hidden, 1), f32)],
        axis=1).astype(mxu_dtype)                 # (H, F+8)

    head = jnp.concatenate(                       # (H, 2) = [w2 | b2] (kept f32)
        [params["w2"], jnp.broadcast_to(params["b2"], (hidden, 1))],
        axis=1).astype(f32)
    return wenc, w1p, head


@functools.partial(jax.jit, static_argnames=("mxu_dtype", "tm_max"))
def network_critic_forward(pcs, pcs_dir, params, *,
                           mxu_dtype=jnp.bfloat16, tm_max=8192):
    """pcs: (B, N, 3) f32, pcs_dir: (B, N, 6) f32 -> (B, N, 1) f32."""
    B, N, _ = pcs.shape
    M = B * N
    feat_dim = params["wf"].shape[1]
    hidden = params["w1"].shape[1]
    kp = feat_dim + 8

    # Row tile: multiple of 128 (rows live on the lane axis), as large as
    # tm_max (amortizes the ~0.35 us per-grid-step overhead).  Soft >=2-step
    # target only — enough to shard across v7x's two TensorCores without
    # shrinking tiles on single-TC v5e/v6e.  tm_max=8192 keeps the f32
    # intermediates comfortably inside v5e's 16 MiB scoped-VMEM default.
    tm = max(128, min(int(tm_max), _round_up(pl.cdiv(M, 2), 128)))
    m_pad = _round_up(M, tm)
    grid = (m_pad // tm,)

    # One packed, channel-major input slab: rows [x y z dx dy dz 1 0].
    # Single combined (M,8)->(8,M) transpose (no separate 3-/6-wide transposes,
    # and the unused first 3 pcs_dir channels never reach the kernel).
    packed = jnp.concatenate(
        [pcs.reshape(M, 3).astype(jnp.float32),
         pcs_dir.reshape(M, 6)[:, 3:6].astype(jnp.float32),
         jnp.ones((M, 1), jnp.float32),
         jnp.zeros((M, 1), jnp.float32)],
        axis=-1)                                               # (M, 8)
    in8 = jnp.pad(packed.T, ((0, 0), (0, m_pad - M)))          # (8, m_pad)

    wenc, w1p, head = _pack_params(params, mxu_dtype)

    out = pl.pallas_call(
        _critic_kernel,
        out_shape=jax.ShapeDtypeStruct((1, m_pad), jnp.float32),
        grid_spec=pltpu.PrefetchScalarGridSpec(
            num_scalar_prefetch=0,
            grid=grid,
            in_specs=[
                pl.BlockSpec((8, tm), lambda i: (0, i)),        # packed point slab
                pl.BlockSpec((feat_dim, 8), lambda i: (0, 0)),  # encoder weight (resident)
                pl.BlockSpec((hidden, kp), lambda i: (0, 0)),   # packed critic weight (resident)
                pl.BlockSpec((hidden, 2), lambda i: (0, 0)),    # [w2 | b2] (resident)
            ],
            out_specs=pl.BlockSpec((1, tm), lambda i: (0, i)),
        ),
        compiler_params=pltpu.CompilerParams(
            dimension_semantics=("parallel",)),
    )(in8, wenc, w1p, head)

    # Padded tail lanes hold sigmoid of zero-padded garbage; sliced away here.
    return out[0, :M].reshape(B, N, 1)


def _reference_forward(pcs, pcs_dir, params):
    """Pure-JAX fp32 mirror of the PyTorch forward (same stubbed encoder)."""
    feat = jnp.maximum(pcs @ params["wf"] + params["bf"], 0.0)      # (B, N, F)
    whole = jnp.concatenate([feat, pcs_dir], axis=-1)               # (B, N, F+6)
    whole = whole.at[:, :, -6:-3].set(0.0)
    h = jnp.maximum(whole @ params["w1"] + params["b1"], 0.0)
    return jax.nn.sigmoid(h @ params["w2"] + params["b2"])          # (B, N, 1)


if __name__ == "__main__":
    key = jax.random.PRNGKey(0)
    k_p, k_pcs, k_dir = jax.random.split(key, 3)

    B, N = 2, 100          # M = 200 -> exercises a 2-step grid and the padded tail
    pcs = jax.random.normal(k_pcs, (B, N, 3), jnp.float32)
    rd = jax.random.normal(k_dir, (B, N, 3), jnp.float32)
    rd = rd / jnp.linalg.norm(rd, axis=-1, keepdims=True)
    pcs_dir = jnp.concatenate([pcs, rd], axis=-1)                   # (B, N, 6)

    params = make_params(k_p)

    out = network_critic_forward(pcs, pcs_dir, params,
                                 mxu_dtype=jnp.bfloat16, tm_max=8192)
    out = jax.block_until_ready(out)

    ref = _reference_forward(pcs, pcs_dir, params)
    assert out.shape == (B, N, 1)
    # Both Linear layers (including the folded encoder stub, dir half and b1)
    # now feed bf16 operands to the MXU with f32 accumulation; observed
    # deviation from the pure-f32 reference on the sigmoid output is a few
    # 1e-3, so 2e-2 leaves comfortable margin.
    err = float(jnp.max(jnp.abs(out - ref)))
    assert err < 2e-2, err

    print("KERNEL_OK")
</pallas_src>

<mosaic_0001>
module attributes {stable_mosaic.version = 11 : i64} {
  func.func @_critic_kernel(%arg0: i32, %arg1: memref<8x128xf32, #tpu.memory_space<vmem>>, %arg2: memref<32x8xbf16, #tpu.memory_space<vmem>>, %arg3: memref<64x40xbf16, #tpu.memory_space<vmem>>, %arg4: memref<64x2xf32, #tpu.memory_space<vmem>>, %arg5: memref<1x128xf32, #tpu.memory_space<vmem>>) attributes {dimension_semantics = [#tpu.dimension_semantics<parallel>], iteration_bounds = array<i64: 2>, scalar_prefetch = 0 : i64, scratch_operands = 0 : i64, tpu.core_type = #tpu.core_type<tc>, window_params = [{transform_indices = @transform_0, window_bounds = array<i64: 8, 128>}, {pipeline_mode = #tpu.pipeline_mode<synchronous>, transform_indices = @transform_1, window_bounds = array<i64: 32, 8>}, {pipeline_mode = #tpu.pipeline_mode<synchronous>, transform_indices = @transform_2, window_bounds = array<i64: 64, 40>}, {pipeline_mode = #tpu.pipeline_mode<synchronous>, transform_indices = @transform_3, window_bounds = array<i64: 64, 2>}, {transform_indices = @transform_4, window_bounds = array<i64: 1, 128>}]} {
    %c0 = arith.constant 0 : index
    %c0_0 = arith.constant 0 : index
    %0 = vector.load %arg1[%c0, %c0_0] : memref<8x128xf32, #tpu.memory_space<vmem>>, vector<8x128xf32>
    %1 = arith.truncf %0 : vector<8x128xf32> to vector<8x128xbf16>
    %c0_1 = arith.constant 0 : index
    %c0_2 = arith.constant 0 : index
    %2 = vector.load %arg2[%c0_1, %c0_2] : memref<32x8xbf16, #tpu.memory_space<vmem>>, vector<32x8xbf16>
    %cst = arith.constant dense<0.000000e+00> : vector<32x128xf32>
    %3 = tpu.matmul %2, %1, %cst {dimension_numbers = #tpu.dot_dimension_numbers<[1], [0], [0], [1], [0, 0, 1, 1], [], []>} : vector<32x8xbf16>, vector<8x128xbf16>, vector<32x128xf32> -> vector<32x128xf32>
    %cst_3 = arith.constant 0.000000e+00 : f32
    %4 = vector.broadcast %cst_3 : f32 to vector<32x128xf32>
    %5 = arith.maximumf %3, %4 : vector<32x128xf32>
    %6 = tpu.concatenate %5, %0 in 0 : vector<32x128xf32>, vector<8x128xf32> -> vector<40x128xf32>
    %7 = arith.truncf %6 : vector<40x128xf32> to vector<40x128xbf16>
    %c0_4 = arith.constant 0 : index
    %c0_5 = arith.constant 0 : index
    %8 = vector.load %arg3[%c0_4, %c0_5] : memref<64x40xbf16, #tpu.memory_space<vmem>>, vector<64x40xbf16>
    %cst_6 = arith.constant dense<0.000000e+00> : vector<64x128xf32>
    %9 = tpu.matmul %8, %7, %cst_6 {dimension_numbers = #tpu.dot_dimension_numbers<[1], [0], [0], [1], [0, 0, 1, 1], [], []>} : vector<64x40xbf16>, vector<40x128xbf16>, vector<64x128xf32> -> vector<64x128xf32>
    %cst_7 = arith.constant 0.000000e+00 : f32
    %10 = vector.broadcast %cst_7 : f32 to vector<64x128xf32>
    %11 = arith.maximumf %9, %10 : vector<64x128xf32>
    %c0_8 = arith.constant 0 : index
    %c0_9 = arith.constant 0 : index
    %12 = vector.load %arg4[%c0_8, %c0_9] : memref<64x2xf32, #tpu.memory_space<vmem>>, vector<64x1xf32>
    %13 = vector.broadcast %12 : vector<64x1xf32> to vector<64x128xf32>
    %14 = arith.mulf %11, %13 : vector<64x128xf32>
    %cst_10 = arith.constant dense<0.000000e+00> : vector<128xf32>
    %15 = vector.multi_reduction <add>, %14, %cst_10 [0] : vector<64x128xf32> to vector<128xf32>
    %16 = vector.shape_cast %15 : vector<128xf32> to vector<1x128xf32>
    %c0_11 = arith.constant 0 : index
    %c1 = arith.constant 1 : index
    %17 = vector.load %arg4[%c0_11, %c1] : memref<64x2xf32, #tpu.memory_space<vmem>>, vector<1x1xf32>
    %18 = vector.broadcast %17 : vector<1x1xf32> to vector<1x128xf32>
    %19 = arith.addf %16, %18 : vector<1x128xf32>
    %20 = arith.negf %19 : vector<1x128xf32>
    %21 = math.exp %20 : vector<1x128xf32>
    %cst_12 = arith.constant 1.000000e+00 : f32
    %22 = vector.broadcast %cst_12 : f32 to vector<1x128xf32>
    %23 = arith.addf %22, %21 : vector<1x128xf32>
    %24 = arith.divf %22, %23 : vector<1x128xf32>
    %c0_13 = arith.constant 0 : index
    %c0_14 = arith.constant 0 : index
    %25 = vector.load %arg5[%c0_13, %c0_14] : memref<1x128xf32, #tpu.memory_space<vmem>>, vector<1x128xf32>
    tpu.vector_store %arg5[%c0_13, %c0_14], %24 {strides = array<i32>} : memref<1x128xf32, #tpu.memory_space<vmem>>, vector<1x128xf32>,
    return
  }
  func.func @transform_0(%arg0: i32) -> (i32, i32) {
    %c0_i32 = arith.constant 0 : i32
    %c0_i32_0 = arith.constant 0 : i32
    return %c0_i32, %arg0 : i32, i32
  }
  func.func @transform_1(%arg0: i32) -> (i32, i32) {
    %c0_i32 = arith.constant 0 : i32
    %c0_i32_0 = arith.constant 0 : i32
    %c0_i32_1 = arith.constant 0 : i32
    return %c0_i32, %c0_i32_0 : i32, i32
  }
  func.func @transform_2(%arg0: i32) -> (i32, i32) {
    %c0_i32 = arith.constant 0 : i32
    %c0_i32_0 = arith.constant 0 : i32
    %c0_i32_1 = arith.constant 0 : i32
    return %c0_i32, %c0_i32_0 : i32, i32
  }
  func.func @transform_3(%arg0: i32) -> (i32, i32) {
    %c0_i32 = arith.constant 0 : i32
    %c0_i32_0 = arith.constant 0 : i32
    %c0_i32_1 = arith.constant 0 : i32
    return %c0_i32, %c0_i32_0 : i32, i32
  }
  func.func @transform_4(%arg0: i32) -> (i32, i32) {
    %c0_i32 = arith.constant 0 : i32
    %c0_i32_0 = arith.constant 0 : i32
    return %c0_i32, %arg0 : i32, i32
  }
}

</mosaic_0001>

<bundles_post_ra>
// kernel: squeeze.1
= control target key start
LH: loop header
LB: loop body
LE: loop exit
PB: predicated region body
PF: predicated region fallthrough
CT: control target
= control target key end

     0   :  { %s84_s0 = inlined_call_operand.vmem [shape: f32[200], index: 0, kind: input, shape index: {}]   ;;  %s85_s1 = inlined_call_operand.hbm [shape: f32[2,100,1], index: 1, kind: output, shape index: {}]  }
   0x1   :  { %v6_v0 = vld [vmem:[%s84_s0] sm:$0x3] }
   0x2   :  { %7 = vst [vmem:[#allocation3] sm:$0x3] %v6_v0 }
   0x3   :  { %2 = vsyncpa [#allocation1], 0  ;;  %vm9_vm0 = vcmask 818176   ;;  %s66_s0 = smov 28   ;;  %vm18_vm1 = vcmask 228352   ;;  %vm21_vm2 = vcmask 818400  }
   0x4   :  { %s67_s8 = smov [#allocation0]  }
   0x5   :  { %s36_s9 = sshll.u32 %s67_s8, 4  ;;  %s37_s9 = int_to_ptr.vmem [resolvable:$true] %s36_s9 }
   0x6   :  { %s44_s10 = scalar_lea.vmem %s37_s9, 32  ;;  %p49_p1 = scmp.lt.s32.totalorder %s37_s9, %s37_s9 }
   0x7   :  { %p45_p0 = scmp.ne.s32.totalorder %s37_s9, %s44_s10  ;;  %p50_p2 = scmp.lt.s32.totalorder %s44_s10, %s44_s10 }
   0x9   :  { %v11_v1 = vld [vmem:[#allocation3] sm:$0x1]   ;;  %v13_v2 = vld [vmem:[#allocation3 + $0x1] sm:$0x1]   ;;  %p51_p3 = por %p50_p2, %p49_p1 }
   0xa   :  { %v8_v3 = vld [vmem:[#allocation3] sm:$0x1]   ;;  %v15_v4 = vsel %vm9_vm0, %v13_v2, %v11_v1 }
   0xb   :  { %10 = vst.msk [vmem:[#allocation2] sm:$0x1] %vm9_vm0, %v8_v3   ;;  %16 = vrot.lane.b32.xlu0 %v15_v4, %s66_s0  ;;  %p52_p4 = pnand %p51_p3, %p45_p0 }
  0x7d   :  { %v17_v5 = vpop.permute.xlu0 %16  }
  0x7e   :  { %20 = vst.msk [vmem:[#allocation2 + $0x1] sm:$0x1] %vm18_vm1, %v17_v5  }
  0x7f   :  { %23 = vst.msk [vmem:[#allocation2 + $0x1] sm:$0x1] %vm21_vm2, %v17_v5  }
  0x86   :  { %v28_v6 = vld [vmem:[#allocation2] sm:$0x3] }
  0x87   :  { %31 = vst [vmem:[#allocation0] sm:$0x3] %v28_v6 }
  0x88   :  { %55 = shalt.err (!%p52_p4)
}
  0x89   :  { %39 = dma.vmem_to_hbm [thread:$0]  %s37_s9, 32, %s85_s1, [#allocation1]  }
  0x8a   :  { %64 = dma.done.wait [#allocation1], 32  }
  0x8b   :  { %65 = vsyncadd [#allocation1], 4294967264 }
  0x8c   :  { %41 = vsyncpa [#allocation1], 1 }

// kernel: network_critic_forward.1
= control target key start
LH: loop header
LB: loop body
LE: loop exit
PB: predicated region body
PF: predicated region fallthrough
CT: control target
= control target key end

     0   :  { %s636_s15 = smov 0   ;;  %s706_s0 = inlined_call_operand.vmem [shape: f32[8,256], index: 0, kind: input, shape index: {}]   ;;  %s707_s1 = inlined_call_operand.vmem [shape: bf16[32,8], index: 1, kind: input, shape index: {}]   ;;  %s708_s2 = inlined_call_operand.vmem [shape: bf16[64,40], index: 2, kind: input, shape index: {}]   ;;  %s709_s3 = inlined_call_operand.vmem [shape: f32[64,2], index: 3, kind: input, shape index: {}]   ;;  %s710_s4 = inlined_call_operand.vmem [shape: f32[1,256], index: 4, kind: output, shape index: {}]  }
   0x1 LB: > { %s518_s16 = sadd.s32 4294967295, %s607_s15   ;;  %p522_p0 = scmp.ge.s32.totalorder %s607_s15, 1  ;;  %s607_s15 = sphi %s636_s15, %s14_s15  }
   0x2   : > { %p161_p1 = scmp.lt.s32.totalorder %s607_s15, 3 }
   0x4   : > { %p162_p2 = pnand %p522_p0, %p161_p1 }
   0x5   : > { %p184_p3 = scmp.lt.s32.totalorder (!%p162_p2), %s518_s16, 1 }
   0x6   : > { %165 = sbr.rel (%p162_p2) target bundleno = 494 (0x1ee), region = 36 }
   0xb   : > { %v591_v0 = vld [vmem:[%s707_s1] sm:$0xff]   ;;  %vm208_vm0 = vcmask 64512   ;;  %s712_s16 = smov (!%p184_p3, %s518_s16), 1  ;;  %vm215_vm1 = vcmask 1043456   ;;  %v592_v4 = vld [vmem:[%s707_s1 + $0x8] sm:$0xff]   ;;  %vm302_vm2 = vcmask 326656  }
   0xc   : > { %551 = vmatprep.mubr.msk.bf16.mxu0 %vm208_vm0, %v591_v0  ;;  %s523_s19 = sshll.u32 %s712_s16, 3  ;;  %v593_v5 = vld [vmem:[%s708_s2] sm:$0xff]   ;;  %v594_v6 = vld [vmem:[%s708_s2 + $0x10] sm:$0xff]   ;;  %v609_v9 = vmov 0   ;;  %v389_v10 = vld [vmem:[%s709_s3 + $0x8] sm:$0xff]  ;;  %v610_v17 = vmov 1   ;;  %s190_s29 = scalar_lea.vmem %s710_s4, %s712_s16 }
   0xd   : > { %s187_s22 = scalar_lea.vmem %s706_s0, %s523_s19  ;;  %565 = vmatprep.mubr.msk.bf16.mxu1 %vm302_vm2, %v594_v6  ;;  %v388_v7 = vld [vmem:[%s709_s3] sm:$0xff]  ;;  %v390_v8 = vld [vmem:[%s709_s3 + $0x10] sm:$0xff]  ;;  %588 = vset.pattern.permute.xlu0 %v609_v9  ;;  %v391_v11 = vld [vmem:[%s709_s3 + $0x18] sm:$0xff] }
   0xe   : > { %v192_v1 = vld [vmem:[%s187_s22] sm:$0xff]  ;;  %589 = vset.pattern.permute.xlu1 %v609_v9  ;;  %398 = vperm.xlu0 %588, %v388_v7   ;;  %v393_v13 = vld [vmem:[%s709_s3 + $0x28] sm:$0xff]  ;;  %v394_v14 = vld [vmem:[%s709_s3 + $0x30] sm:$0xff] }
   0xf   : > { %v193_v2 = vpack.c.bf16 %v192_v1, %v192_v1  ;;  %408 = vperm.xlu1 %589, %v390_v8   ;;  %v392_v12 = vld [vmem:[%s709_s3 + $0x20] sm:$0xff]  ;;  %v395_v15 = vld [vmem:[%s709_s3 + $0x38] sm:$0xff]  ;;  %v595_v28 = vld [vmem:[%s708_s2 + $0x8] sm:$0xff]  }
  0x10   : > { %v457_v16 = vld [vmem:[%s709_s3] sm:$0x1]  ;;  %v596_v29 = vld [vmem:[%s708_s2 + $0x18] sm:$0xff]  }
  0x11   : > { %575 = vmatprep.subr.msk.bf16.mxu0 %vm215_vm1, %v193_v2  ;;  %v217_v3 = vsel %vm215_vm1, %v193_v2, 0  ;;  %577 = vmatprep.subr.msk.bf16.mxu1 %vm215_vm1, %v193_v2 }
  0x12   : > { %550 = vmatpush3.bf16.msra.mxu0 %v217_v3  ;;  %572 = vmatpush3.bf16.msra.mxu1 %v217_v3 }
  0x13   : > { %576 = vmatprep.subr.msk.bf16.mxu0 %vm215_vm1, %v193_v2  ;;  %403 = vperm.xlu0 %588, %v389_v10  }
  0x14   : > { %413 = vperm.xlu1 %589, %v391_v11  }
  0x15   : > { %552 = vmatmul.mubr.msk.bf16.vlgmr.msra.gmra.mxu0 %vm208_vm0, %v592_v4 }
  0x16   : > { %556 = vmatpush3.bf16.msra.mxu0 %v217_v3  ;;  %561 = vmatprep.mubr.msk.bf16.mxu0 %vm302_vm2, %v593_v5 }
  0x17   : > { %418 = vperm.xlu0 %588, %v392_v12  }
  0x18   : > { %423 = vperm.xlu1 %589, %v393_v13  }
  0x1b   : > { %428 = vperm.xlu0 %588, %v394_v14  }
  0x1c   : > { %433 = vperm.xlu1 %589, %v395_v15  }
  0x1f   : > { %590 = vset.pattern.permute.xlu0 %v610_v17 }
  0x20   : > { %460 = vperm.xlu0 %590, %v457_v16  }
  0x89   : > { %v399_v30 = vpop.permute.xlu0 %398 }
  0x8a   : > { %v409_v31 = vpop.permute.xlu1 %408 }
  0x8e   : > { %v404_v36 = vpop.permute.xlu0 %403 }
  0x8f   : > { %v414_v38 = vpop.permute.xlu1 %413 }
  0x92   : > { %v419_v47 = vpop.permute.xlu0 %418 }
  0x93   : > { %v424_v52 = vpop.permute.xlu1 %423 }
  0x96   : > { %v429_v59 = vpop.permute.xlu0 %428 }
  0x97   : > { %v434_v63 = vpop.permute.xlu1 %433 }
  0x9b   : > { %v461_v10 = vpop.permute.xlu0 %460 }
  0xd5   : > { %v553_v18 = vpop.f32.mrf.mxu0 }
  0xd6   : > { %v270_v21 = vmax.f32 %v553_v18, 0.0 }
  0xd7   : > { %v253_v19 = vpop.f32.mrf.mxu0 }
  0xd8   : > { %v268_v24 = vmax.f32 %v253_v19, 0.0 }
  0xd9   : > { %v554_v20 = vpop.f32.mrf.mxu0 }
  0xda   : > { %v271_v22 = vmax.f32 %v554_v20, 0.0 }
  0xdb   : > { %v256_v23 = vpop.f32.mrf.mxu0 }
  0xdc   : > { %v273_v25 = vpack.c.bf16 %v271_v22, %v270_v21  ;;  %v269_v26 = vmax.f32 %v256_v23, 0.0 }
  0xde   : > { %v272_v27 = vpack.c.bf16 %v269_v26, %v268_v24  ;;  %557 = vmatprep.subr.bf16.mxu0 %v273_v25  ;;  %570 = vmatprep.subr.bf16.mxu1 %v273_v25 }
  0xdf   : > { %558 = vmatpush3.bf16.msra.mxu0 %v273_v25  ;;  %573 = vmatpush3.bf16.msra.mxu1 %v273_v25 }
  0xe0   : > { %559 = vmatprep.subr.bf16.mxu0 %v272_v27  ;;  %571 = vmatprep.subr.bf16.mxu1 %v272_v27 }
  0xe3   : > { %560 = vmatpush3.bf16.msra.mxu0 %v272_v27  ;;  %574 = vmatpush3.bf16.msra.mxu1 %v272_v27 }
  0xe6   : > { %562 = vmatmul.mubr.msk.bf16.vlgmr.msra.gmra.mxu0 %vm302_vm2, %v595_v28  ;;  %566 = vmatmul.mubr.msk.bf16.vlgmr.msra.gmra.mxu1 %vm302_vm2, %v596_v29 }
 0x1a6   : > { %v563_v32 = vpop.f32.mrf.mxu0  ;;  %v567_v33 = vpop.f32.mrf.mxu1 }
 0x1a7   : > { %v382_v42 = vmax.f32 %v563_v32, 0.0  ;;  %v386_v56 = vmax.f32 %v567_v33, 0.0 }
 0x1a8   : > { %v349_v34 = vpop.f32.mrf.mxu0  ;;  %v365_v35 = vpop.f32.mrf.mxu1 }
 0x1a9   : > { %v380_v39 = vmax.f32 %v349_v34, 0.0  ;;  %v438_v49 = vmul.f32 %v409_v31, %v382_v42  ;;  %v384_v50 = vmax.f32 %v365_v35, 0.0  ;;  %v442_v0 = vmul.f32 %v429_v59, %v386_v56 }
 0x1aa   : > { %v564_v37 = vpop.f32.mrf.mxu0  ;;  %v568_v40 = vpop.f32.mrf.mxu1 }
 0x1ab   : > { %v436_v44 = vmul.f32 %v399_v30, %v380_v39  ;;  %v383_v45 = vmax.f32 %v564_v37, 0.0  ;;  %v440_v57 = vmul.f32 %v419_v47, %v384_v50  ;;  %v387_v60 = vmax.f32 %v568_v40, 0.0 }
 0x1ac   : > { %v352_v41 = vpop.f32.mrf.mxu0  ;;  %v368_v48 = vpop.f32.mrf.mxu1 }
 0x1ad   : > { %v381_v43 = vmax.f32 %v352_v41, 0.0  ;;  %v439_v53 = vmul.f32 %v414_v38, %v383_v45  ;;  %v385_v55 = vmax.f32 %v368_v48, 0.0  ;;  %v443_v2 = vmul.f32 %v434_v63, %v387_v60 }
 0x1af   : > { %v437_v46 = vmul.f32 %v404_v36, %v381_v43  ;;  %v441_v61 = vmul.f32 %v424_v52, %v385_v55 }
 0x1b1   : > { %v444_v51 = vadd.f32 %v437_v46, %v436_v44 }
 0x1b3   : > { %v445_v54 = vadd.f32 %v444_v51, %v438_v49 }
 0x1b5   : > { %v446_v58 = vadd.f32 %v445_v54, %v439_v53 }
 0x1b7   : > { %v447_v62 = vadd.f32 %v446_v58, %v440_v57 }
 0x1b9   : > { %v448_v1 = vadd.f32 %v447_v62, %v441_v61 }
 0x1bb   : > { %v449_v3 = vadd.f32 %v448_v1, %v442_v0 }
 0x1bd   : > { %v450_v4 = vadd.f32 %v449_v3, %v443_v2 }
 0x1bf   : > { %v451_v5 = vrot.slane %v450_v4, 4 }
 0x1c1   : > { %v452_v6 = vadd.f32 %v451_v5, %v450_v4 }
 0x1c3   : > { %v453_v7 = vrot.slane %v452_v6, 2 }
 0x1c5   : > { %v454_v8 = vadd.f32 %v453_v7, %v452_v6 }
 0x1c7   : > { %v455_v9 = vrot.slane %v454_v8, 1 }
 0x1c9   : > { %v456_v11 = vadd.f32 %v455_v9, %v454_v8 }
 0x1cb   : > { %v463_v12 = vadd.f32 %v461_v10, %v456_v11 }
 0x1cd   : > { %v536_v13 = vmul.f32 -1.442695, %v463_v12 }
 0x1cf   : > { %597 = vpow2.f32 %v536_v13 }
 0x1dc   : > { %v598_v14 = vpop.eup %597 }
 0x1dd   : > { %v467_v15 = vadd.f32 1.0, %v598_v14 }
 0x1df   : > { %599 = vrcp.f32 %v467_v15 }
 0x1ec   : > { %v600_v16 = vpop.eup %599 }
 0x1ed   : > { %470 = vst [vmem:[%s190_s29] sm:$0x1] %v600_v16 }
 0x1ee PF: > { %s14_s15 = sadd.s32 1, %s607_s15  }
 0x1ef   : > { %p11_p4 = scmp.ge.s32.totalorder %s14_s15, 4  }
 0x1f1   :  { %13 = sbr.rel (!%p11_p4) target bundleno = 1 (0x1), region = 66 }

</bundles_post_ra>
